<compile_context>
chip_gen: v6e
topology: v6e:2x2x1
jax: 0.10.0
libtpu: 0.0.40
codegen_flags: <defaults>
</compile_context>

<pallas_src>
import functools

import jax
import jax.numpy as jnp
from jax.experimental import pallas as pl
from jax.experimental.pallas import tpu as pltpu


# ----------------------------------------------------------------------------- kernels
def _kv_proj_kernel(xkv_ref, wk_ref, wv_ref, bk_ref, bv_ref, kT_ref, v_ref):
    """Once-per-batch K/V projection; K is emitted pre-transposed as (C, Nk)."""
    x = xkv_ref[0]                                                     # (Nk, C) bf16
    k = (jnp.dot(x, wk_ref[...], preferred_element_type=jnp.float32)
         + bk_ref[...]).astype(kT_ref.dtype)                           # (Nk, C)
    v_ref[0] = (jnp.dot(x, wv_ref[...], preferred_element_type=jnp.float32)
                + bv_ref[...]).astype(v_ref.dtype)                     # (Nk, C)
    kT_ref[0] = k.T                                                    # one XLU transpose / batch


def _pyramid_attn_kernel(xq_ref, kT_ref, v_ref, wq_ref, wp_ref, bq_ref, bp_ref,
                         out_ref, o_acc, *, num_heads, head_dim):
    xq = xq_ref[0]                                                     # (TQ, C) bf16
    kT = kT_ref[0]                                                     # (C, Nk) bf16
    v = v_ref[0]                                                       # (Nk, C) bf16

    # Fused full-width Q projection for ALL heads (scale folded into wq/bq host-side).
    q = (jnp.dot(xq, wq_ref[...], preferred_element_type=jnp.float32)
         + bq_ref[...]).astype(xq.dtype)                               # (TQ, C)

    # Per-head score / softmax / P@V, writing each head's output straight into the
    # (TQ, C) f32 scratch slab (no list, no concat -> no spills / lane relayouts).
    for h in range(num_heads):
        lo = h * head_dim
        s = jnp.dot(q[:, lo:lo + head_dim], kT[lo:lo + head_dim, :],
                    preferred_element_type=jnp.float32)                # (TQ, Nk) f32
        s = s - jnp.max(s, axis=-1, keepdims=True)
        p = jnp.exp(s)
        p = p * pl.reciprocal(jnp.sum(p, axis=-1, keepdims=True), approx=True)
        o_acc[:, lo:lo + head_dim] = jnp.dot(
            p.astype(v.dtype), v[:, lo:lo + head_dim],
            preferred_element_type=jnp.float32)                        # (TQ, hd)

    # Single fused output projection over the full channel width.
    y = jnp.dot(o_acc[...].astype(xq.dtype), wp_ref[...],
                preferred_element_type=jnp.float32) + bp_ref[...]
    out_ref[0] = y.astype(out_ref.dtype)


# ----------------------------------------------------------------------------- helpers
def _cdiv(a, b):
    return -(-a // b)


def _pick_tq(nq, target):
    """Largest divisor of nq <= target that is a multiple of 16; else `target`
    (the caller zero-pads nq up to a multiple of the returned tile)."""
    if nq <= target:
        return nq
    for t in range(target, 15, -1):
        if nq % t == 0 and t % 16 == 0:
            return t
    return target


# ----------------------------------------------------------------------------- wrapper
def pyramid_attention_pallas(x_nchw, params, *, num_heads, sr_ratio=1,
                             compute_dtype=jnp.bfloat16):
    """Forward pass of PyramidAttention. Returns (y_nchw, None, None)."""
    B, C, H, W = x_nchw.shape
    assert C % num_heads == 0
    hd = C // num_heads
    scale = hd ** -0.5
    Nq = H * W

    # Hardware-aware budgets: 128 MiB parts (v5e/v6e) -> bigger tiles, ~96 MiB limit;
    # 64 MiB v7x -> TQ target 256, ~48 MiB limit.
    try:
        vmem_cap = int(pltpu.get_tpu_info().vmem_capacity_bytes)
    except Exception:
        vmem_cap = 64 << 20
    tq_target = 512 if vmem_cap > (96 << 20) else 256

    # Cast to bf16 BEFORE the big NCHW->NHWC relayout (half the bytes moved).
    x_c = x_nchw.astype(compute_dtype)
    xq_tok = jnp.transpose(x_c, (0, 2, 3, 1)).reshape(B, Nq, C)

    if sr_ratio > 1:
        # proj_ds (strided conv + LayerNorm) is plain-JAX glue; tiny vs the attention.
        xd = jax.lax.conv_general_dilated(
            x_nchw, params["w_ds"], window_strides=(sr_ratio, sr_ratio),
            padding="VALID", dimension_numbers=("NCHW", "OIHW", "NCHW"))
        xd = xd + params["b_ds"][None, :, None, None]
        xt = jnp.transpose(xd, (0, 2, 3, 1))                 # (B, H/sr, W/sr, C)
        mu = jnp.mean(xt, axis=-1, keepdims=True)
        var = jnp.var(xt, axis=-1, keepdims=True)
        xt = (xt - mu) / jnp.sqrt(var + 1e-5) * params["ln_g"] + params["ln_b"]
        Hk, Wk = H // sr_ratio, W // sr_ratio
        xkv_tok = xt.reshape(B, Hk * Wk, C).astype(compute_dtype)
    else:
        xkv_tok = xq_tok
    Nk = xkv_tok.shape[1]

    # Full-width (all-heads) weights, transposed so the kernels do tokens @ W.
    # Attention scale is folded into the Q projection host-side (exact in f32).
    wq_t = (params["wq"] * scale).T.astype(compute_dtype)          # (C, C)
    wk_t = params["wkv"][:C].T.astype(compute_dtype)               # (C, C)
    wv_t = params["wkv"][C:].T.astype(compute_dtype)               # (C, C)
    wp_t = params["wp"].T.astype(compute_dtype)                    # (C, C)
    bq = (params["bq"] * scale).reshape(1, C).astype(jnp.float32)
    bk = params["bkv"][:C].reshape(1, C).astype(jnp.float32)
    bv = params["bkv"][C:].reshape(1, C).astype(jnp.float32)
    bp = params["bp"].reshape(1, C).astype(jnp.float32)

    # Query tiling: multiple of 16 (bf16 sublane packing); pad Nq instead of ever
    # falling back to a huge undivided tile.  Split finer if the grid would only have
    # one step (keeps both v7x TensorCores busy).
    TQ = _pick_tq(Nq, tq_target)
    if B * _cdiv(Nq, TQ) < 2 and TQ >= 32:
        TQ = max(16, ((TQ // 2 + 15) // 16) * 16)
    n_qt = _cdiv(Nq, TQ)
    Nq_pad = n_qt * TQ
    if Nq_pad != Nq:
        xq_tok = jnp.pad(xq_tok, ((0, 0), (0, Nq_pad - Nq), (0, 0)))

    # Explicit VMEM budget: double-buffered tiles + weights + score/temp headroom,
    # clamped to [32 MiB, 0.75 * physical VMEM].
    bpe = jnp.dtype(compute_dtype).itemsize
    vmem_est = (2 * TQ * C * bpe            # xq tile (double-buffered)
                + 2 * C * Nk * bpe          # kT
                + 2 * Nk * C * bpe          # v
                + 2 * 2 * C * C * bpe       # wq, wp (worst case double-buffered)
                + 2 * TQ * C * bpe          # output tile
                + TQ * C * 4                # f32 scratch slab
                + 2 * TQ * Nk * 4           # score temps
                + 6 * TQ * C * 4)           # misc f32 temps
    vmem_limit = int(min(max(2 * vmem_est, 32 << 20), (3 * vmem_cap) // 4))

    # ---- stage 1: once-per-batch K/V projection (K pre-transposed to (C, Nk)) -------
    kT, v = pl.pallas_call(
        _kv_proj_kernel,
        out_shape=(jax.ShapeDtypeStruct((B, C, Nk), compute_dtype),
                   jax.ShapeDtypeStruct((B, Nk, C), compute_dtype)),
        grid=(B,),
        in_specs=[
            pl.BlockSpec((1, Nk, C), lambda b: (b, 0, 0)),
            pl.BlockSpec((C, C), lambda b: (0, 0)),
            pl.BlockSpec((C, C), lambda b: (0, 0)),
            pl.BlockSpec((1, C), lambda b: (0, 0)),
            pl.BlockSpec((1, C), lambda b: (0, 0)),
        ],
        out_specs=(pl.BlockSpec((1, C, Nk), lambda b: (b, 0, 0)),
                   pl.BlockSpec((1, Nk, C), lambda b: (b, 0, 0))),
        compiler_params=pltpu.CompilerParams(
            dimension_semantics=("parallel",),
            vmem_limit_bytes=vmem_limit),
    )(xkv_tok, wk_t, wv_t, bk, bv)

    # ---- stage 2: tiled attention + fused output projection --------------------------
    batch_qi = lambda b, qi: (b, qi, 0)
    batch_only = lambda b, qi: (b, 0, 0)
    const2 = lambda b, qi: (0, 0)

    def build_attn_call(single_buffer_weights):
        wmode = ({"pipeline_mode": pl.Buffered(1)}
                 if single_buffer_weights else {})
        return pl.pallas_call(
            functools.partial(_pyramid_attn_kernel,
                              num_heads=num_heads, head_dim=hd),
            out_shape=jax.ShapeDtypeStruct((B, Nq_pad, C), compute_dtype),
            grid=(B, n_qt),
            in_specs=[
                pl.BlockSpec((1, TQ, C), batch_qi),            # xq query tile
                pl.BlockSpec((1, C, Nk), batch_only),          # K^T (per batch)
                pl.BlockSpec((1, Nk, C), batch_only),          # V   (per batch)
                pl.BlockSpec((C, C), const2, **wmode),         # wq (scale folded)
                pl.BlockSpec((C, C), const2, **wmode),         # wp
                pl.BlockSpec((1, C), const2, **wmode),         # bq (scale folded)
                pl.BlockSpec((1, C), const2, **wmode),         # bp
            ],
            out_specs=pl.BlockSpec((1, TQ, C), batch_qi),
            scratch_shapes=[pltpu.VMEM((TQ, C), jnp.float32)],
            compiler_params=pltpu.CompilerParams(
                dimension_semantics=("parallel", "parallel"),
                vmem_limit_bytes=vmem_limit),
        )

    args = (xq_tok, kT, v, wq_t, wp_t, bq, bp)
    try:
        # Grid-invariant weights/biases: single-buffered to save VMEM headroom.
        y_tok = build_attn_call(True)(*args)
    except Exception:
        # Fallback if this Pallas build rejects buffer_count=1.
        y_tok = build_attn_call(False)(*args)

    y_tok = y_tok[:, :Nq]
    y = jnp.transpose(y_tok.reshape(B, H, W, C), (0, 3, 1, 2)).astype(x_nchw.dtype)
    return y, None, None


# ----------------------------------------------------------------------------- reference
def pyramid_attention_ref(x, params, *, num_heads, sr_ratio=1):
    B, C, H, W = x.shape
    hd = C // num_heads
    scale = hd ** -0.5
    Nq = H * W

    def conv1x1(t, w, b):
        return jnp.einsum("oc,bchw->bohw", w, t) + b[None, :, None, None]

    q = conv1x1(x, params["wq"], params["bq"])
    if sr_ratio > 1:
        xd = jax.lax.conv_general_dilated(
            x, params["w_ds"], (sr_ratio, sr_ratio), "VALID",
            dimension_numbers=("NCHW", "OIHW", "NCHW"))
        xd = xd + params["b_ds"][None, :, None, None]
        xt = jnp.transpose(xd, (0, 2, 3, 1))
        mu = xt.mean(-1, keepdims=True)
        var = xt.var(-1, keepdims=True)
        xt = (xt - mu) / jnp.sqrt(var + 1e-5) * params["ln_g"] + params["ln_b"]
        xd = jnp.transpose(xt, (0, 3, 1, 2))
        kv = conv1x1(xd, params["wkv"], params["bkv"])
        Nk = (H // sr_ratio) * (W // sr_ratio)
    else:
        kv = conv1x1(x, params["wkv"], params["bkv"])
        Nk = Nq
    k, v = kv[:, :C], kv[:, C:]
    qf = q.reshape(B * num_heads, hd, Nq) * scale
    kf = k.reshape(B * num_heads, hd, Nk)
    vf = v.reshape(B * num_heads, hd, Nk)
    attn = jnp.einsum("bcm,bcn->bmn", qf, kf)
    attn = jax.nn.softmax(attn, axis=2)
    o = jnp.einsum("bmn,bcn->bcm", attn, vf).reshape(B, C, H, W)
    return conv1x1(o, params["wp"], params["bp"])


# ----------------------------------------------------------------------------- main
if __name__ == "__main__":
    B, C, H, W = 2, 32, 16, 16
    num_heads = 8

    key = jax.random.PRNGKey(0)
    ks = jax.random.split(key, 12)
    params = {
        "wq":  jax.random.normal(ks[0], (C, C), jnp.float32) * 0.05,
        "bq":  jax.random.normal(ks[1], (C,), jnp.float32) * 0.01,
        "wkv": jax.random.normal(ks[2], (2 * C, C), jnp.float32) * 0.05,
        "bkv": jax.random.normal(ks[3], (2 * C,), jnp.float32) * 0.01,
        "wp":  jax.random.normal(ks[4], (C, C), jnp.float32) * 0.05,
        "bp":  jax.random.normal(ks[5], (C,), jnp.float32) * 0.01,
        # proj_ds params (used only for sr_ratio > 1)
        "w_ds": jax.random.normal(ks[6], (C, C, 2, 2), jnp.float32) * 0.05,
        "b_ds": jax.random.normal(ks[7], (C,), jnp.float32) * 0.01,
        "ln_g": jnp.ones((C,), jnp.float32),
        "ln_b": jnp.zeros((C,), jnp.float32),
    }
    x = jax.random.normal(ks[8], (B, C, H, W), jnp.float32)

    ok = True
    for sr in (1, 2):
        y, _, _ = pyramid_attention_pallas(x, params, num_heads=num_heads, sr_ratio=sr)
        y = jax.block_until_ready(y)
        y_ref = pyramid_attention_ref(x, params, num_heads=num_heads, sr_ratio=sr)
        # bf16 MXU operands / bf16 output writeback (f32 accumulation) -> loose tolerance.
        if not jnp.allclose(y, y_ref, rtol=5e-2, atol=5e-3):
            ok = False
            print(f"sr={sr}: max abs err {jnp.max(jnp.abs(y - y_ref))}")

    if ok:
        print("KERNEL_OK")
</pallas_src>

<mosaic_0001>
module attributes {stable_mosaic.version = 11 : i64} {
  func.func @_kv_proj_kernel(%arg0: i32, %arg1: memref<1x256x32xbf16, #tpu.memory_space<vmem>>, %arg2: memref<32x32xbf16, #tpu.memory_space<vmem>>, %arg3: memref<32x32xbf16, #tpu.memory_space<vmem>>, %arg4: memref<1x32xf32, #tpu.memory_space<vmem>>, %arg5: memref<1x32xf32, #tpu.memory_space<vmem>>, %arg6: memref<1x32x256xbf16, #tpu.memory_space<vmem>>, %arg7: memref<1x256x32xbf16, #tpu.memory_space<vmem>>) attributes {dimension_semantics = [#tpu.dimension_semantics<parallel>], iteration_bounds = array<i64: 2>, scalar_prefetch = 0 : i64, scratch_operands = 0 : i64, tpu.core_type = #tpu.core_type<tc>, window_params = [{transform_indices = @transform_0, window_bounds = array<i64: 1, 256, 32>}, {pipeline_mode = #tpu.pipeline_mode<synchronous>, transform_indices = @transform_1, window_bounds = array<i64: 32, 32>}, {pipeline_mode = #tpu.pipeline_mode<synchronous>, transform_indices = @transform_2, window_bounds = array<i64: 32, 32>}, {pipeline_mode = #tpu.pipeline_mode<synchronous>, transform_indices = @transform_3, window_bounds = array<i64: 1, 32>}, {pipeline_mode = #tpu.pipeline_mode<synchronous>, transform_indices = @transform_4, window_bounds = array<i64: 1, 32>}, {transform_indices = @transform_5, window_bounds = array<i64: 1, 32, 256>}, {transform_indices = @transform_6, window_bounds = array<i64: 1, 256, 32>}]} {
    %c0 = arith.constant 0 : index
    %c0_0 = arith.constant 0 : index
    %c0_1 = arith.constant 0 : index
    %0 = vector.load %arg1[%c0, %c0_0, %c0_1] : memref<1x256x32xbf16, #tpu.memory_space<vmem>>, vector<1x256x32xbf16>
    %1 = vector.shape_cast %0 : vector<1x256x32xbf16> to vector<256x32xbf16>
    %c0_2 = arith.constant 0 : index
    %c0_3 = arith.constant 0 : index
    %2 = vector.load %arg2[%c0_2, %c0_3] : memref<32x32xbf16, #tpu.memory_space<vmem>>, vector<32x32xbf16>
    %cst = arith.constant dense<0.000000e+00> : vector<256x32xf32>
    %3 = tpu.matmul %1, %2, %cst {dimension_numbers = #tpu.dot_dimension_numbers<[1], [0], [0], [1], [0, 0, 1, 1], [], []>} : vector<256x32xbf16>, vector<32x32xbf16>, vector<256x32xf32> -> vector<256x32xf32>
    %c0_4 = arith.constant 0 : index
    %c0_5 = arith.constant 0 : index
    %4 = vector.load %arg4[%c0_4, %c0_5] : memref<1x32xf32, #tpu.memory_space<vmem>>, vector<1x32xf32>
    %5 = vector.broadcast %4 : vector<1x32xf32> to vector<256x32xf32>
    %6 = arith.addf %3, %5 : vector<256x32xf32>
    %7 = arith.truncf %6 : vector<256x32xf32> to vector<256x32xbf16>
    %c0_6 = arith.constant 0 : index
    %c0_7 = arith.constant 0 : index
    %8 = vector.load %arg3[%c0_6, %c0_7] : memref<32x32xbf16, #tpu.memory_space<vmem>>, vector<32x32xbf16>
    %cst_8 = arith.constant dense<0.000000e+00> : vector<256x32xf32>
    %9 = tpu.matmul %1, %8, %cst_8 {dimension_numbers = #tpu.dot_dimension_numbers<[1], [0], [0], [1], [0, 0, 1, 1], [], []>} : vector<256x32xbf16>, vector<32x32xbf16>, vector<256x32xf32> -> vector<256x32xf32>
    %c0_9 = arith.constant 0 : index
    %c0_10 = arith.constant 0 : index
    %10 = vector.load %arg5[%c0_9, %c0_10] : memref<1x32xf32, #tpu.memory_space<vmem>>, vector<1x32xf32>
    %11 = vector.broadcast %10 : vector<1x32xf32> to vector<256x32xf32>
    %12 = arith.addf %9, %11 : vector<256x32xf32>
    %13 = arith.truncf %12 : vector<256x32xf32> to vector<256x32xbf16>
    %c0_11 = arith.constant 0 : index
    %c0_12 = arith.constant 0 : index
    %c0_13 = arith.constant 0 : index
    %14 = vector.load %arg7[%c0_11, %c0_12, %c0_13] : memref<1x256x32xbf16, #tpu.memory_space<vmem>>, vector<1x256x32xbf16>
    %15 = vector.shape_cast %14 : vector<1x256x32xbf16> to vector<256x32xbf16>
    %16 = vector.shape_cast %13 : vector<256x32xbf16> to vector<1x256x32xbf16>
    tpu.vector_store %arg7[%c0_11, %c0_12, %c0_13], %16 {strides = array<i32>} : memref<1x256x32xbf16, #tpu.memory_space<vmem>>, vector<1x256x32xbf16>,
    %17 = tpu.transpose %7, [1, 0] : vector<256x32xbf16> -> vector<32x256xbf16>
    %c0_14 = arith.constant 0 : index
    %c0_15 = arith.constant 0 : index
    %c0_16 = arith.constant 0 : index
    %18 = vector.load %arg6[%c0_14, %c0_15, %c0_16] : memref<1x32x256xbf16, #tpu.memory_space<vmem>>, vector<1x32x256xbf16>
    %19 = vector.shape_cast %18 : vector<1x32x256xbf16> to vector<32x256xbf16>
    %20 = vector.shape_cast %17 : vector<32x256xbf16> to vector<1x32x256xbf16>
    tpu.vector_store %arg6[%c0_14, %c0_15, %c0_16], %20 {strides = array<i32>} : memref<1x32x256xbf16, #tpu.memory_space<vmem>>, vector<1x32x256xbf16>,
    return
  }
  func.func @transform_0(%arg0: i32) -> (i32, i32, i32) {
    %c0_i32 = arith.constant 0 : i32
    %c0_i32_0 = arith.constant 0 : i32
    %c0_i32_1 = arith.constant 0 : i32
    return %arg0, %c0_i32, %c0_i32_0 : i32, i32, i32
  }
  func.func @transform_1(%arg0: i32) -> (i32, i32) {
    %c0_i32 = arith.constant 0 : i32
    %c0_i32_0 = arith.constant 0 : i32
    %c0_i32_1 = arith.constant 0 : i32
    return %c0_i32, %c0_i32_0 : i32, i32
  }
  func.func @transform_2(%arg0: i32) -> (i32, i32) {
    %c0_i32 = arith.constant 0 : i32
    %c0_i32_0 = arith.constant 0 : i32
    %c0_i32_1 = arith.constant 0 : i32
    return %c0_i32, %c0_i32_0 : i32, i32
  }
  func.func @transform_3(%arg0: i32) -> (i32, i32) {
    %c0_i32 = arith.constant 0 : i32
    %c0_i32_0 = arith.constant 0 : i32
    %c0_i32_1 = arith.constant 0 : i32
    return %c0_i32, %c0_i32_0 : i32, i32
  }
  func.func @transform_4(%arg0: i32) -> (i32, i32) {
    %c0_i32 = arith.constant 0 : i32
    %c0_i32_0 = arith.constant 0 : i32
    %c0_i32_1 = arith.constant 0 : i32
    return %c0_i32, %c0_i32_0 : i32, i32
  }
  func.func @transform_5(%arg0: i32) -> (i32, i32, i32) {
    %c0_i32 = arith.constant 0 : i32
    %c0_i32_0 = arith.constant 0 : i32
    %c0_i32_1 = arith.constant 0 : i32
    return %arg0, %c0_i32, %c0_i32_0 : i32, i32, i32
  }
  func.func @transform_6(%arg0: i32) -> (i32, i32, i32) {
    %c0_i32 = arith.constant 0 : i32
    %c0_i32_0 = arith.constant 0 : i32
    %c0_i32_1 = arith.constant 0 : i32
    return %arg0, %c0_i32, %c0_i32_0 : i32, i32, i32
  }
}

</mosaic_0001>

<bundles_post_ra>
// kernel: tpu_custom_call.1
= control target key start
LH: loop header
LB: loop body
LE: loop exit
PB: predicated region body
PF: predicated region fallthrough
CT: control target
= control target key end

     0   :  { %12 = vsyncpa [#allocation3], 0  ;;  %s1857_s0 = inlined_call_operand.vmem [shape: bf16[2,256,32], index: 0, kind: input, shape index: {}]   ;;  %s1858_s1 = inlined_call_operand.vmem [shape: bf16[32,32], index: 1, kind: input, shape index: {}]   ;;  %s1859_s2 = inlined_call_operand.vmem [shape: bf16[32,32], index: 2, kind: input, shape index: {}]   ;;  %s1860_s3 = inlined_call_operand.vmem [shape: f32[1,32], index: 3, kind: input, shape index: {}]   ;;  %s1861_s4 = inlined_call_operand.vmem [shape: f32[1,32], index: 4, kind: input, shape index: {}]   ;;  %s1862_s5 = inlined_call_operand.hbm [shape: bf16[2,32,256], index: 5, kind: output, shape index: {0}]   ;;  %s1863_s6 = inlined_call_operand.vmem [shape: bf16[2,256,32], index: 6, kind: output, shape index: {1}]  }
   0x1   :  { %14 = vsyncpa [#allocation3 + $0x1], 0  ;;  %s1543_s21 = smov 0   ;;  %s1545_s22 = smov 0  }
   0x2   :  { %s1547_s23 = smov 0   ;;  %s1549_s24 = smov 0  }
   0x3 LB: > { %s1564_s25 = sadd.s32 4294967295, %s1503_s24   ;;  %s1135_s26 = sadd.s32 4294967294, %s1503_s24   ;;  %s1503_s24 = sphi %s1549_s24, %s1869_s24   ;;  %s1499_s23 = sphi %s1547_s23, %s1868_s23   ;;  %s1495_s22 = sphi %s1545_s22, %s1867_s22   ;;  %s1491_s21 = sphi %s1543_s21, %s1866_s21  }
   0x4   : > { %s1568_s27 = sadd.s32 1, %s1503_s24   ;;  %s137_s28 = sadd.s32 1, %s1499_s23 }
   0x5   : > { %s134_s29 = ssub.s32 %s1503_s24, %s1568_s27  ;;  %p147_p0 = scmp.ne.s32.totalorder %s1499_s23, %s1495_s22 }
   0x6   : > { %p135_p1 = scmp.eq.s32.totalorder %s134_s29, 0  ;;  %p148_p2 = scmp.eq.s32.totalorder %s1564_s25, 1 }
   0x7   : > { %p153_p3 = scmp.ne.s32.totalorder %s1495_s22, %s1491_s21  ;;  %p154_p4 = scmp.eq.s32.totalorder %s1135_s26, 1 }
   0x8   : > { %s1579_s30 = scalar_select %p135_p1, %s1499_s23, %s137_s28  }
   0x9   : > { %p1581_p5 = por %p148_p2, %p147_p0  ;;  %p1585_p6 = por %p154_p4, %p153_p3 }
   0xa   : > { %p1138_p7 = scmp.ge.s32.totalorder %s1503_s24, 1  ;;  %p218_p8 = scmp.lt.s32.totalorder %s1503_s24, 3 }
   0xc   : > { %p219_p9 = pnand %p1138_p7, %p218_p8 }
   0xd   : > { %p253_p10 = scmp.lt.s32.totalorder (!%p219_p9), %s1564_s25, 1  ;;  %s1505_s29 = smov (!%p219_p9), [#allocation2]  }
   0xe   : > { %222 = sbr.rel (%p219_p9) target bundleno = 382 (0x17e), region = 40  ;;  %s1447_s9 = sshll.u32 (!%p219_p9), %s1505_s29, 4  ;;  %s1448_s9 = int_to_ptr.vmem [resolvable:$false] %s1447_s9 }
   0xf   : > { %s1449_s10 = scalar_lea.vmem (!%p219_p9), %s1448_s9, 1024 }
  0x13   : > { %v1423_v0 = vld [vmem:[%s1858_s1 + $0x8] sm:$0xff]   ;;  %v1424_v1 = vld [vmem:[%s1858_s1] sm:$0xff]   ;;  %s1599_s13 = scalar_select %p253_p10, %s1564_s25, 1  ;;  %vm399_vm0 = vcmask 261120   ;;  %vm937_vm1 = vcmask 257024  }
  0x14   : > { %1310 = vmatprep.subr.bf16.mxu0 %v1423_v0  ;;  %v1441_v2 = vld [vmem:[%s1859_s2 + $0x8] sm:$0xff]   ;;  %v1442_v3 = vld [vmem:[%s1859_s2] sm:$0xff]  }
  0x15   : > { %1311 = vmatpush3.bf16.msra.mxu0 %v1423_v0  ;;  %s1239_s18 = sshll.u32 %s1599_s13, 7  ;;  %1346 = vmatprep.subr.bf16.mxu1 %v1441_v2  ;;  %v1666_v21 = vld [vmem:[%s1861_s4] ss:$0 sm:$0xff]  ;;  %s243_s13 = sand.u32 1, %s1495_s22  }
  0x16   : > { %1312 = vmatprep.subr.bf16.mxu0 %v1424_v1  ;;  %s1613_s26 = scalar_lea.vmem %s1857_s0, %s1239_s18  ;;  %1347 = vmatpush3.bf16.msra.mxu1 %v1441_v2  ;;  %s1674_s11 = scalar_lea.vmem %s1863_s6, %s1239_s18  ;;  %v1680_v29 = vld [vmem:[%s1860_s3] ss:$0 sm:$0xff] }
  0x17   : > { %v1425_v4 = vld [vmem:[%s1613_s26] sm:$0xff]   ;;  %1348 = vmatprep.subr.bf16.mxu1 %v1442_v3  ;;  %v1426_v5 = vld [vmem:[%s1613_s26 + $0x8] sm:$0xff]   ;;  %v1427_v6 = vld [vmem:[%s1613_s26 + $0x10] sm:$0xff]   ;;  %s1139_s15 = sshll.u32 %s243_s13, 5  ;;  %s1273_s18 = sshll.u32 %s1564_s25, 9 }
  0x18   : > { %1314 = vmatprep.mubr.msk.bf16.mxu0 %vm399_vm0, %v1425_v4  ;;  %1350 = vmatprep.mubr.msk.bf16.mxu1 %vm399_vm0, %v1425_v4  ;;  %v1428_v7 = vld [vmem:[%s1613_s26 + $0x18] sm:$0xff]   ;;  %v1429_v8 = vld [vmem:[%s1613_s26 + $0x20] sm:$0xff]   ;;  %v1430_v9 = vld [vmem:[%s1613_s26 + $0x28] sm:$0xff]   ;;  %s245_s16 = scalar_lea.vmem [#allocation2], %s1139_s15  ;;  %s1817_s28 = scalar_lea.sflag [#allocation3], %s243_s13 }
  0x19   : > { %1313 = vmatpush3.bf16.msra.mxu0 %v1424_v1  ;;  %v1431_v10 = vld [vmem:[%s1613_s26 + $0x30] sm:$0xff]   ;;  %v1432_v11 = vld [vmem:[%s1613_s26 + $0x38] sm:$0xff]   ;;  %v1433_v12 = vld [vmem:[%s1613_s26 + $0x40] sm:$0xff]   ;;  %s1045_s17 = sshll.u32 %s245_s16, 4  ;;  %s1810_s17 = int_to_ptr.vmem [resolvable:$true] %s1045_s17 }
  0x1a   : > { %1349 = vmatpush3.bf16.msra.mxu1 %v1442_v3  ;;  %v1434_v13 = vld [vmem:[%s1613_s26 + $0x48] sm:$0xff]   ;;  %v1435_v14 = vld [vmem:[%s1613_s26 + $0x50] sm:$0xff]   ;;  %v1436_v15 = vld [vmem:[%s1613_s26 + $0x58] sm:$0xff]   ;;  %s1443_s25 = scalar_lea.vmem %s1810_s17, 512  ;;  %p1450_p0 = scmp.lt.s32.totalorder %s1810_s17, %s1448_s9 }
  0x1b   : > { %v1437_v16 = vld [vmem:[%s1613_s26 + $0x60] sm:$0xff]   ;;  %v1438_v17 = vld [vmem:[%s1613_s26 + $0x68] sm:$0xff]   ;;  %v1439_v18 = vld [vmem:[%s1613_s26 + $0x70] sm:$0xff]   ;;  %p1444_p11 = scmp.ne.s32.totalorder %s1810_s17, %s1443_s25  ;;  %p1451_p1 = scmp.lt.s32.totalorder %s1449_s10, %s1443_s25 }
  0x1c   : > { %1315 = vmatmul.mubr.msk.bf16.vlgmr.msra.gmra.mxu0 %vm399_vm0, %v1426_v5  ;;  %v1440_v19 = vld [vmem:[%s1613_s26 + $0x78] sm:$0xff]   ;;  %s1815_s26 = scalar_lea.hbm %s1862_s5, %s1273_s18 }
  0x1d   : > { %1318 = vmatprep.mubr.msk.bf16.mxu0 %vm399_vm0, %v1427_v6  ;;  %1351 = vmatmul.mubr.msk.bf16.vlgmr.msra.gmra.mxu1 %vm399_vm0, %v1426_v5  ;;  %p1445_p12 = pnand %p1444_p11, %p1581_p5  ;;  %p1452_p2 = por %p1451_p1, %p1450_p0 }
  0x1e   : > { %1354 = vmatprep.mubr.msk.bf16.mxu1 %vm399_vm0, %v1427_v6 }
  0x1f   : > { %p1446_p13 = pneg %p1445_p12 }
  0x21   : > { %p1453_p3 = pnand %p1452_p2, %p1446_p13 }
  0x24   : > { %1319 = vmatmul.mubr.msk.bf16.gmra.mxu0 %vm399_vm0, %v1428_v7 }
  0x25   : > { %1322 = vmatprep.mubr.msk.bf16.mxu0 %vm399_vm0, %v1429_v8  ;;  %1355 = vmatmul.mubr.msk.bf16.gmra.mxu1 %vm399_vm0, %v1428_v7 }
  0x26   : > { %1358 = vmatprep.mubr.msk.bf16.mxu1 %vm399_vm0, %v1429_v8 }
  0x2c   : > { %1323 = vmatmul.mubr.msk.bf16.gmra.mxu0 %vm399_vm0, %v1430_v9 }
  0x2d   : > { %1326 = vmatprep.mubr.msk.bf16.mxu0 %vm399_vm0, %v1431_v10  ;;  %1359 = vmatmul.mubr.msk.bf16.gmra.mxu1 %vm399_vm0, %v1430_v9 }
  0x2e   : > { %1362 = vmatprep.mubr.msk.bf16.mxu1 %vm399_vm0, %v1431_v10 }
  0x34   : > { %1327 = vmatmul.mubr.msk.bf16.gmra.mxu0 %vm399_vm0, %v1432_v11 }
  0x35   : > { %1330 = vmatprep.mubr.msk.bf16.mxu0 %vm399_vm0, %v1433_v12  ;;  %1363 = vmatmul.mubr.msk.bf16.gmra.mxu1 %vm399_vm0, %v1432_v11 }
  0x36   : > { %1366 = vmatprep.mubr.msk.bf16.mxu1 %vm399_vm0, %v1433_v12 }
  0x3c   : > { %1331 = vmatmul.mubr.msk.bf16.gmra.mxu0 %vm399_vm0, %v1434_v13 }
  0x3d   : > { %1334 = vmatprep.mubr.msk.bf16.mxu0 %vm399_vm0, %v1435_v14  ;;  %1367 = vmatmul.mubr.msk.bf16.gmra.mxu1 %vm399_vm0, %v1434_v13 }
  0x3e   : > { %1370 = vmatprep.mubr.msk.bf16.mxu1 %vm399_vm0, %v1435_v14 }
  0x44   : > { %1335 = vmatmul.mubr.msk.bf16.gmra.mxu0 %vm399_vm0, %v1436_v15 }
  0x45   : > { %1338 = vmatprep.mubr.msk.bf16.mxu0 %vm399_vm0, %v1437_v16  ;;  %1371 = vmatmul.mubr.msk.bf16.gmra.mxu1 %vm399_vm0, %v1436_v15 }
  0x46   : > { %1374 = vmatprep.mubr.msk.bf16.mxu1 %vm399_vm0, %v1437_v16 }
  0x4c   : > { %1339 = vmatmul.mubr.msk.bf16.gmra.mxu0 %vm399_vm0, %v1438_v17 }
  0x4d   : > { %1342 = vmatprep.mubr.msk.bf16.mxu0 %vm399_vm0, %v1439_v18  ;;  %1375 = vmatmul.mubr.msk.bf16.gmra.mxu1 %vm399_vm0, %v1438_v17 }
  0x4e   : > { %1378 = vmatprep.mubr.msk.bf16.mxu1 %vm399_vm0, %v1439_v18 }
  0x54   : > { %1343 = vmatmul.mubr.msk.bf16.gmra.mxu0 %vm399_vm0, %v1440_v19 }
  0x55   : > { %1379 = vmatmul.mubr.msk.bf16.gmra.mxu1 %vm399_vm0, %v1440_v19 }
  0xdc   : > { %v1316_v20 = vpop.f32.mrf.mxu0 }
  0xdd   : > { %v1352_v23 = vpop.f32.mrf.mxu1  ;;  %v491_v44 = vadd.f32 %v1316_v20, %v1680_v29 }
  0xde   : > { %v482_v22 = vpop.f32.mrf.mxu0  ;;  %v691_v24 = vadd.f32 %v1352_v23, %v1666_v21 }
  0xdf   : > { %v682_v26 = vpop.f32.mrf.mxu1  ;;  %v483_v32 = vadd.f32 %v1680_v29, %v482_v22 }
  0xe0   : > { %v1317_v25 = vpop.f32.mrf.mxu0  ;;  %v1243_v27 = vpack.c.bf16 %v691_v24, %v691_v24  ;;  %v683_v28 = vadd.f32 %v1666_v21, %v682_v26 }
  0xe1   : > { %v1353_v31 = vpop.f32.mrf.mxu1  ;;  %v494_v38 = vadd.f32 %v1317_v25, %v1680_v29 }
  0xe2   : > { %v485_v30 = vpop.f32.mrf.mxu0  ;;  %940 = vst.msk [vmem:[%s1674_s11 + $0x8] sm:$0xf] %vm937_vm1, %v1243_v27  ;;  %v1241_v34 = vpack.c.bf16 %v683_v28, %v683_v28  ;;  %v694_v35 = vadd.f32 %v1353_v31, %v1666_v21 }
  0xe3   : > { %v486_v33 = vadd.f32 %v1680_v29, %v485_v30  ;;  %v685_v37 = vpop.f32.mrf.mxu1  ;;  %v610_v49 = vpack.c.bf16 %v494_v38, %v491_v44 }
  0xe4   : > { %v1320_v36 = vpop.f32.mrf.mxu0  ;;  %938 = vst.msk [vmem:[%s1674_s11] sm:$0xf] %vm937_vm1, %v1241_v34  ;;  %v1244_v40 = vpack.c.bf16 %v694_v35, %v694_v35  ;;  %v686_v41 = vadd.f32 %v1666_v21, %v685_v37 }
  0xe5   : > { %v609_v39 = vpack.c.bf16 %v486_v33, %v483_v32  ;;  %v1356_v43 = vpop.f32.mrf.mxu1  ;;  %v507_v2 = vadd.f32 %v1320_v36, %v1680_v29 }
  0xe6   : > { %v498_v42 = vpop.f32.mrf.mxu0  ;;  %941 = vst.msk [vmem:[%s1674_s11 + $0xc] sm:$0xf] %vm937_vm1, %v1244_v40  ;;  %v1242_v45 = vpack.c.bf16 %v686_v41, %v686_v41  ;;  %v707_v46 = vadd.f32 %v1356_v43, %v1666_v21 }
  0xe7   : > { %970 = vxpose.xlu0.c.b16.start [1/8] (narrow) %v609_v39, 32  ;;  %v698_v48 = vpop.f32.mrf.mxu1  ;;  %v499_v54 = vadd.f32 %v1680_v29, %v498_v42 }
  0xe8   : > { %v1321_v47 = vpop.f32.mrf.mxu0  ;;  %939 = vst.msk [vmem:[%s1674_s11 + $0x4] sm:$0xf] %vm937_vm1, %v1242_v45  ;;  %v1247_v50 = vpack.c.bf16 %v707_v46, %v707_v46  ;;  %v699_v51 = vadd.f32 %v1666_v21, %v698_v48 }
  0xe9   : > { %v1357_v53 = vpop.f32.mrf.mxu1  ;;  %v510_v60 = vadd.f32 %v1321_v47, %v1680_v29 }
  0xea   : > { %v501_v52 = vpop.f32.mrf.mxu0  ;;  %944 = vst.msk [vmem:[%s1674_s11 + $0x18] sm:$0xf] %vm937_vm1, %v1247_v50  ;;  %v1245_v56 = vpack.c.bf16 %v699_v51, %v699_v51  ;;  %v710_v57 = vadd.f32 %v1357_v53, %v1666_v21 }
  0xeb   : > { %v502_v55 = vadd.f32 %v1680_v29, %v501_v52  ;;  %971 = vxpose.xlu0.c.b16.cont [2/8] (narrow) %v610_v49, 32  ;;  %v701_v59 = vpop.f32.mrf.mxu1  ;;  %v612_v7 = vpack.c.bf16 %v510_v60, %v507_v2 }
  0xec   : > { %v1324_v58 = vpop.f32.mrf.mxu0  ;;  %942 = vst.msk [vmem:[%s1674_s11 + $0x10] sm:$0xf] %vm937_vm1, %v1245_v56  ;;  %v1248_v62 = vpack.c.bf16 %v710_v57, %v710_v57  ;;  %v702_v63 = vadd.f32 %v1666_v21, %v701_v59 }
  0xed   : > { %v611_v61 = vpack.c.bf16 %v502_v55, %v499_v54  ;;  %v1360_v1 = vpop.f32.mrf.mxu1  ;;  %v523_v25 = vadd.f32 %v1324_v58, %v1680_v29 }
  0xee   : > { %v514_v0 = vpop.f32.mrf.mxu0  ;;  %945 = vst.msk [vmem:[%s1674_s11 + $0x1c] sm:$0xf] %vm937_vm1, %v1248_v62  ;;  %v1246_v3 = vpack.c.bf16 %v702_v63, %v702_v63  ;;  %v723_v4 = vadd.f32 %v1360_v1, %v1666_v21 }
  0xef   : > { %972 = vxpose.xlu0.c.b16.cont [3/8] (narrow) %v611_v61, 32  ;;  %v714_v6 = vpop.f32.mrf.mxu1  ;;  %v515_v12 = vadd.f32 %v1680_v29, %v514_v0 }
  0xf0   : > { %v1325_v5 = vpop.f32.mrf.mxu0  ;;  %943 = vst.msk [vmem:[%s1674_s11 + $0x14] sm:$0xf] %vm937_vm1, %v1246_v3  ;;  %v1251_v8 = vpack.c.bf16 %v723_v4, %v723_v4  ;;  %v715_v9 = vadd.f32 %v1666_v21, %v714_v6 }
  0xf1   : > { %v1361_v11 = vpop.f32.mrf.mxu1  ;;  %v526_v18 = vadd.f32 %v1325_v5, %v1680_v29 }
  0xf2   : > { %v517_v10 = vpop.f32.mrf.mxu0  ;;  %948 = vst.msk [vmem:[%s1674_s11 + $0x28] sm:$0xf] %vm937_vm1, %v1251_v8  ;;  %v1249_v14 = vpack.c.bf16 %v715_v9, %v715_v9  ;;  %v726_v15 = vadd.f32 %v1361_v11, %v1666_v21 }
  0xf3   : > { %v518_v13 = vadd.f32 %v1680_v29, %v517_v10  ;;  %973 = vxpose.xlu0.c.b16.cont [4/8] (narrow) %v612_v7, 32  ;;  %v717_v17 = vpop.f32.mrf.mxu1  ;;  %v614_v31 = vpack.c.bf16 %v526_v18, %v523_v25 }
  0xf4   : > { %v1328_v16 = vpop.f32.mrf.mxu0  ;;  %946 = vst.msk [vmem:[%s1674_s11 + $0x20] sm:$0xf] %vm937_vm1, %v1249_v14  ;;  %v1252_v20 = vpack.c.bf16 %v726_v15, %v726_v15  ;;  %v718_v22 = vadd.f32 %v1666_v21, %v717_v17 }
  0xf5   : > { %v613_v19 = vpack.c.bf16 %v518_v13, %v515_v12  ;;  %v1364_v24 = vpop.f32.mrf.mxu1  ;;  %v539_v48 = vadd.f32 %v1328_v16, %v1680_v29 }
  0xf6   : > { %v530_v23 = vpop.f32.mrf.mxu0  ;;  %949 = vst.msk [vmem:[%s1674_s11 + $0x2c] sm:$0xf] %vm937_vm1, %v1252_v20  ;;  %v1250_v26 = vpack.c.bf16 %v718_v22, %v718_v22  ;;  %v739_v27 = vadd.f32 %v1364_v24, %v1666_v21 }
  0xf7   : > { %974 = vxpose.xlu0.c.b16.cont [5/8] (narrow) %v613_v19, 32  ;;  %v730_v30 = vpop.f32.mrf.mxu1  ;;  %v531_v36 = vadd.f32 %v1680_v29, %v530_v23 }
  0xf8   : > { %v1329_v28 = vpop.f32.mrf.mxu0  ;;  %947 = vst.msk [vmem:[%s1674_s11 + $0x24] sm:$0xf] %vm937_vm1, %v1250_v26  ;;  %v1255_v32 = vpack.c.bf16 %v739_v27, %v739_v27  ;;  %v731_v33 = vadd.f32 %v1666_v21, %v730_v30 }
  0xf9   : > { %v1365_v35 = vpop.f32.mrf.mxu1  ;;  %v542_v42 = vadd.f32 %v1329_v28, %v1680_v29 }
  0xfa   : > { %v533_v34 = vpop.f32.mrf.mxu0  ;;  %952 = vst.msk [vmem:[%s1674_s11 + $0x38] sm:$0xf] %vm937_vm1, %v1255_v32  ;;  %v1253_v38 = vpack.c.bf16 %v731_v33, %v731_v33  ;;  %v742_v39 = vadd.f32 %v1365_v35, %v1666_v21 }
  0xfb   : > { %v534_v37 = vadd.f32 %v1680_v29, %v533_v34  ;;  %975 = vxpose.xlu0.c.b16.cont [6/8] (narrow) %v614_v31, 32  ;;  %v733_v41 = vpop.f32.mrf.mxu1  ;;  %v616_v53 = vpack.c.bf16 %v542_v42, %v539_v48 }
  0xfc   : > { %v1332_v40 = vpop.f32.mrf.mxu0  ;;  %950 = vst.msk [vmem:[%s1674_s11 + $0x30] sm:$0xf] %vm937_vm1, %v1253_v38  ;;  %v1256_v44 = vpack.c.bf16 %v742_v39, %v742_v39  ;;  %v734_v45 = vadd.f32 %v1666_v21, %v733_v41 }
  0xfd   : > { %v615_v43 = vpack.c.bf16 %v534_v37, %v531_v36  ;;  %v1368_v47 = vpop.f32.mrf.mxu1  ;;  %v555_v6 = vadd.f32 %v1332_v40, %v1680_v29 }
  0xfe   : > { %v546_v46 = vpop.f32.mrf.mxu0  ;;  %953 = vst.msk [vmem:[%s1674_s11 + $0x3c] sm:$0xf] %vm937_vm1, %v1256_v44  ;;  %v1254_v49 = vpack.c.bf16 %v734_v45, %v734_v45  ;;  %v755_v50 = vadd.f32 %v1368_v47, %v1666_v21 }
  0xff   : > { %976 = vxpose.xlu0.c.b16.cont [7/8] (narrow) %v615_v43, 32  ;;  %v746_v52 = vpop.f32.mrf.mxu1  ;;  %v547_v58 = vadd.f32 %v1680_v29, %v546_v46 }
 0x100   : > { %v1333_v51 = vpop.f32.mrf.mxu0  ;;  %951 = vst.msk [vmem:[%s1674_s11 + $0x34] sm:$0xf] %vm937_vm1, %v1254_v49  ;;  %v1259_v54 = vpack.c.bf16 %v755_v50, %v755_v50  ;;  %v747_v55 = vadd.f32 %v1666_v21, %v746_v52 }
 0x101   : > { %v1369_v57 = vpop.f32.mrf.mxu1  ;;  %v558_v0 = vadd.f32 %v1333_v51, %v1680_v29 }
 0x102   : > { %v549_v56 = vpop.f32.mrf.mxu0  ;;  %956 = vst.msk [vmem:[%s1674_s11 + $0x48] sm:$0xf] %vm937_vm1, %v1259_v54  ;;  %v1257_v60 = vpack.c.bf16 %v747_v55, %v747_v55  ;;  %v758_v61 = vadd.f32 %v1369_v57, %v1666_v21 }
 0x103   : > { %v550_v59 = vadd.f32 %v1680_v29, %v549_v56  ;;  %977 = vxpose.xlu0.c.b16.end [8/8] (narrow) %v616_v53, 32  ;;  %v749_v63 = vpop.f32.mrf.mxu1  ;;  %v618_v11 = vpack.c.bf16 %v558_v0, %v555_v6 }
 0x104   : > { %v1336_v62 = vpop.f32.mrf.mxu0  ;;  %954 = vst.msk [vmem:[%s1674_s11 + $0x40] sm:$0xf] %vm937_vm1, %v1257_v60  ;;  %v1260_v2 = vpack.c.bf16 %v758_v61, %v758_v61  ;;  %v750_v3 = vadd.f32 %v1666_v21, %v749_v63 }
 0x105   : > { %v617_v1 = vpack.c.bf16 %v550_v59, %v547_v58  ;;  %v1372_v5 = vpop.f32.mrf.mxu1  ;;  %v571_v30 = vadd.f32 %v1336_v62, %v1680_v29 }
 0x106   : > { %v562_v4 = vpop.f32.mrf.mxu0  ;;  %957 = vst.msk [vmem:[%s1674_s11 + $0x4c] sm:$0xf] %vm937_vm1, %v1260_v2  ;;  %v1258_v7 = vpack.c.bf16 %v750_v3, %v750_v3  ;;  %v771_v8 = vadd.f32 %v1372_v5, %v1666_v21 }
 0x107   : > { %986 = vxpose.xlu1.c.b16.start [1/8] (narrow) %v617_v1, 32  ;;  %v762_v10 = vpop.f32.mrf.mxu1  ;;  %v563_v16 = vadd.f32 %v1680_v29, %v562_v4 }
 0x108   : > { %v1337_v9 = vpop.f32.mrf.mxu0  ;;  %955 = vst.msk [vmem:[%s1674_s11 + $0x44] sm:$0xf] %vm937_vm1, %v1258_v7  ;;  %v1263_v12 = vpack.c.bf16 %v771_v8, %v771_v8  ;;  %v763_v13 = vadd.f32 %v1666_v21, %v762_v10 }
 0x109   : > { %v1373_v15 = vpop.f32.mrf.mxu1  ;;  %v574_v23 = vadd.f32 %v1337_v9, %v1680_v29 }
 0x10a   : > { %v565_v14 = vpop.f32.mrf.mxu0  ;;  %960 = vst.msk [vmem:[%s1674_s11 + $0x58] sm:$0xf] %vm937_vm1, %v1263_v12  ;;  %v1261_v18 = vpack.c.bf16 %v763_v13, %v763_v13  ;;  %v774_v19 = vadd.f32 %v1373_v15, %v1666_v21 }
 0x10b   : > { %v566_v17 = vadd.f32 %v1680_v29, %v565_v14  ;;  %987 = vxpose.xlu1.c.b16.cont [2/8] (narrow) %v618_v11, 32  ;;  %v765_v22 = vpop.f32.mrf.mxu1  ;;  %v620_v35 = vpack.c.bf16 %v574_v23, %v571_v30 }
 0x10c   : > { %v1340_v20 = vpop.f32.mrf.mxu0  ;;  %958 = vst.msk [vmem:[%s1674_s11 + $0x50] sm:$0xf] %vm937_vm1, %v1261_v18  ;;  %v1264_v25 = vpack.c.bf16 %v774_v19, %v774_v19  ;;  %v766_v26 = vadd.f32 %v1666_v21, %v765_v22 }
 0x10d   : > { %v619_v24 = vpack.c.bf16 %v566_v17, %v563_v16  ;;  %v1376_v28 = vpop.f32.mrf.mxu1  ;;  %v587_v52 = vadd.f32 %v1340_v20, %v1680_v29 }
 0x10e   : > { %v578_v27 = vpop.f32.mrf.mxu0  ;;  %961 = vst.msk [vmem:[%s1674_s11 + $0x5c] sm:$0xf] %vm937_vm1, %v1264_v25  ;;  %v1262_v31 = vpack.c.bf16 %v766_v26, %v766_v26  ;;  %v787_v32 = vadd.f32 %v1376_v28, %v1666_v21 }
 0x10f   : > { %988 = vxpose.xlu1.c.b16.cont [3/8] (narrow) %v619_v24, 32  ;;  %v778_v34 = vpop.f32.mrf.mxu1  ;;  %v579_v40 = vadd.f32 %v1680_v29, %v578_v27 }
 0x110   : > { %v1341_v33 = vpop.f32.mrf.mxu0  ;;  %959 = vst.msk [vmem:[%s1674_s11 + $0x54] sm:$0xf] %vm937_vm1, %v1262_v31  ;;  %v1267_v36 = vpack.c.bf16 %v787_v32, %v787_v32  ;;  %v779_v37 = vadd.f32 %v1666_v21, %v778_v34 }
 0x111   : > { %v1377_v39 = vpop.f32.mrf.mxu1  ;;  %v590_v46 = vadd.f32 %v1341_v33, %v1680_v29 }
 0x112   : > { %v581_v38 = vpop.f32.mrf.mxu0  ;;  %964 = vst.msk [vmem:[%s1674_s11 + $0x68] sm:$0xf] %vm937_vm1, %v1267_v36  ;;  %v1265_v42 = vpack.c.bf16 %v779_v37, %v779_v37  ;;  %v790_v43 = vadd.f32 %v1377_v39, %v1666_v21 }
 0x113   : > { %v582_v41 = vadd.f32 %v1680_v29, %v581_v38  ;;  %989 = vxpose.xlu1.c.b16.cont [4/8] (narrow) %v620_v35, 32  ;;  %v781_v45 = vpop.f32.mrf.mxu1  ;;  %v622_v57 = vpack.c.bf16 %v590_v46, %v587_v52 }
 0x114   : > { %v1344_v44 = vpop.f32.mrf.mxu0  ;;  %962 = vst.msk [vmem:[%s1674_s11 + $0x60] sm:$0xf] %vm937_vm1, %v1265_v42  ;;  %v1268_v48 = vpack.c.bf16 %v790_v43, %v790_v43  ;;  %v782_v49 = vadd.f32 %v1666_v21, %v781_v45 }
 0x115   : > { %v621_v47 = vpack.c.bf16 %v582_v41, %v579_v40  ;;  %v1380_v51 = vpop.f32.mrf.mxu1  ;;  %v603_v7 = vadd.f32 %v1344_v44, %v1680_v29 }
 0x116   : > { %v594_v50 = vpop.f32.mrf.mxu0  ;;  %965 = vst.msk [vmem:[%s1674_s11 + $0x6c] sm:$0xf] %vm937_vm1, %v1268_v48  ;;  %v1266_v53 = vpack.c.bf16 %v782_v49, %v782_v49  ;;  %v803_v54 = vadd.f32 %v1380_v51, %v1666_v21 }
 0x117   : > { %990 = vxpose.xlu1.c.b16.cont [5/8] (narrow) %v621_v47, 32  ;;  %v794_v56 = vpop.f32.mrf.mxu1  ;;  %v595_v62 = vadd.f32 %v1680_v29, %v594_v50 }
 0x118   : > { %v1345_v55 = vpop.f32.mrf.mxu0  ;;  %963 = vst.msk [vmem:[%s1674_s11 + $0x64] sm:$0xf] %vm937_vm1, %v1266_v53  ;;  %v1271_v58 = vpack.c.bf16 %v803_v54, %v803_v54  ;;  %v795_v59 = vadd.f32 %v1666_v21, %v794_v56 }
 0x119   : > { %v1381_v61 = vpop.f32.mrf.mxu1  ;;  %v606_v3 = vadd.f32 %v1345_v55, %v1680_v29 }
 0x11a   : > { %v597_v60 = vpop.f32.mrf.mxu0  ;;  %968 = vst.msk [vmem:[%s1674_s11 + $0x78] sm:$0xf] %vm937_vm1, %v1271_v58  ;;  %v1269_v0 = vpack.c.bf16 %v795_v59, %v795_v59  ;;  %v806_v1 = vadd.f32 %v1381_v61, %v1666_v21 }
 0x11b   : > { %v598_v63 = vadd.f32 %v1680_v29, %v597_v60  ;;  %991 = vxpose.xlu1.c.b16.cont [6/8] (narrow) %v622_v57, 32  ;;  %v797_v2 = vpop.f32.mrf.mxu1  ;;  %v624_v9 = vpack.c.bf16 %v606_v3, %v603_v7 }
 0x11c   : > { %966 = vst.msk [vmem:[%s1674_s11 + $0x70] sm:$0xf] %vm937_vm1, %v1269_v0  ;;  %v1272_v5 = vpack.c.bf16 %v806_v1, %v806_v1  ;;  %v798_v6 = vadd.f32 %v1666_v21, %v797_v2 }
 0x11d   : > { %v623_v4 = vpack.c.bf16 %v598_v63, %v595_v62 }
 0x11e   : > { %969 = vst.msk [vmem:[%s1674_s11 + $0x7c] sm:$0xf] %vm937_vm1, %v1272_v5  ;;  %v1270_v8 = vpack.c.bf16 %v798_v6, %v798_v6 }
 0x11f   : > { %992 = vxpose.xlu1.c.b16.cont [7/8] (narrow) %v623_v4, 32 }
 0x120   : > { %967 = vst.msk [vmem:[%s1674_s11 + $0x74] sm:$0xf] %vm937_vm1, %v1270_v8 }
 0x123   : > { %993 = vxpose.xlu1.c.b16.end [8/8] (narrow) %v624_v9, 32 }
 0x149   : > { %v978_v10 = vpop.trf.xlu0 }
 0x14d   : > { %v979_v21 = vpop.trf.xlu0 }
 0x169   : > { %v994_v11 = vpop.trf.xlu1 }
 0x16a   : > { %v1230_v12 = vcombine.low %v978_v10, %v994_v11  ;;  %v1231_v13 = vcombine.high %v978_v10, %v994_v11 }
 0x16c   : > { %1022 = vst [vmem:[%s245_s16] sm:$0xff] %v1230_v12  ;;  %1023 = vst [vmem:[%s245_s16 + $0x8] sm:$0xff] %v1231_v13 }
 0x16d   : > { %v995_v29 = vpop.trf.xlu1 }
 0x16e   : > { %v1232_v14 = vcombine.low %v979_v21, %v995_v29  ;;  %v1233_v15 = vcombine.high %v979_v21, %v995_v29 }
 0x170   : > { %1024 = vst [vmem:[%s245_s16 + $0x10] sm:$0xff] %v1232_v14  ;;  %1025 = vst [vmem:[%s245_s16 + $0x18] sm:$0xff] %v1233_v15 }
 0x171   : > { %1456 = shalt.err (!%p1453_p3)
}
 0x172   : > { %s1457_s11 = scalar_lea.hbm %s1815_s26, 512  ;;  %s1461_s13 = scalar_lea.hbm %s1862_s5, 1024 }
 0x173   : > { %p1458_p4 = scmp.ne.s32.totalorder %s1815_s26, %s1457_s11  ;;  %p1462_p9 = scmp.lt.s32.totalorder %s1815_s26, %s1862_s5 }
 0x174   : > { %p1463_p10 = scmp.lt.s32.totalorder %s1461_s13, %s1457_s11 }
 0x175   : > { %p1459_p7 = pnand %p1458_p4, %p1581_p5 }
 0x176   : > { %p1464_p11 = por %p1463_p10, %p1462_p9 }
 0x177   : > { %p1460_p8 = pneg %p1459_p7 }
 0x179   : > { %p1465_p12 = pnand %p1464_p11, %p1460_p8 }
 0x17b   : > { %1468 = shalt.err (!%p1465_p12)
}
 0x17c   : > { %s1506_s18 = smov 128   ;;  %s1507_s19 = smov 8  }
 0x17d   : > { %1382 = dma.vmem_to_hbm [thread:$0]  (%p1581_p5), %s1810_s17, 512, %s1815_s26, %s1817_s28, %s1506_s18, %s1506_s18, %s1507_s19  }
 0x17e PF: > { %p1388_p13 = scmp.ge.s32.totalorder %s1503_s24, 2  ;;  %s1063_s20 = sand.u32 1, %s1491_s21  }
 0x17f   : > { %s1064_s25 = scalar_lea.sflag [#allocation3], %s1063_s20 }
 0x180   : > { %p1385_p0 = pnand %p1388_p13, %p1585_p6 }
 0x182   : > { %p1386_p1 = pneg %p1385_p0 }
 0x184   : > { %1486 = dma.done.wait (%p1386_p1), %s1064_s25, 512  }
 0x185   : > { %1488 = vsyncadd (%p1386_p1), %s1064_s25, 4294966784  ;;  %p17_p2 = scmp.ge.s32.totalorder %s1568_s27, 4   ;;  %s1866_s21 = smov %s1495_s22 }
 0x186   : > { %s1867_s22 = smov %s1499_s23  ;;  %s1868_s23 = smov %s1579_s30 }
 0x187   : > { %s1869_s24 = smov %s1568_s27  ;;  %19 = sbr.rel (!%p17_p2) target bundleno = 3 (0x3), region = 87 }
 0x18c   :  { %1077 = vsyncpa [#allocation3], 1 }
 0x18d   :  { %1079 = vsyncpa [#allocation3 + $0x1], 1 }

</bundles_post_ra>
